<compile_context>
chip_gen: v6e
topology: v6e:2x2x1
jax: 0.10.0
libtpu: 0.0.40
codegen_flags: <defaults>
</compile_context>

<pallas_src>
import functools

import jax
import jax.numpy as jnp
from jax.experimental import pallas as pl
from jax.experimental.pallas import tpu as pltpu


def _round_up(x, m):
    return (x + m - 1) // m * m


def _mlp_kernel(xlo_ref, xhi_ref, w1a_ref, w1b_ref, b1_ref, w2_ref, b2_ref,
                out_ref):
    """Fused 2-layer MLP head of network_layer (one row tile per grid step).

    xlo/xhi : [row_tile, E]          bf16  (embeds[:, :-1] / embeds[:, 1:])
    w1a/w1b : [E, hidden_pad]        bf16  (w1 split along its input dim)
    b1      : [1, hidden_pad]        f32
    w2      : [hidden_pad, out_pad]  bf16
    b2      : [1, out_pad]           f32
    out     : [row_tile, out_pad]    bf16  raw logits (sigmoid done in wrapper)
    """
    # First layer: h = relu(x_lo @ w1a + x_hi @ w1b + b1), f32 accumulation.
    h = jnp.dot(xlo_ref[...], w1a_ref[...], preferred_element_type=jnp.float32)
    h = h + jnp.dot(xhi_ref[...], w1b_ref[...], preferred_element_type=jnp.float32)
    h = jnp.maximum(h + b1_ref[...], 0.0)  # activation_fn = relu
    # TODO(synk): dropout omitted (eval-mode forward; p has no effect at inference).
    out = jnp.dot(h.astype(w2_ref.dtype), w2_ref[...],
                  preferred_element_type=jnp.float32) + b2_ref[...]
    # Store raw logits, lane-dense, in bf16 (dominant HBM stream halved).
    out_ref[...] = out.astype(out_ref.dtype)


def network_layer_forward(embeds, mask, params, *, network_size, input_num=2,
                          row_tile=1024, compute_dtype=jnp.bfloat16):
    """Pallas implementation of network_layer.forward for input_num <= 2.

    embeds: [B, S, E] float32
    mask:   [B, S, 1] float32 (unused on the input_num<=2 branch, kept for parity)
    returns (links [B, S-1, network_size], distances [B, S-1, 1])
    """
    assert input_num <= 2, "only the input_num <= 2 branch is implemented"
    del mask  # PyTorch forward ignores mask on this branch
    B, S, E = embeds.shape
    rows = B * (S - 1)

    # Row tile: big enough to feed the MXU / amortize ~0.35us per-step pipeline
    # overhead, clamped for tiny shapes, multiple of 16 (bf16 sublane packing).
    row_tile_eff = min(row_tile, _round_up(rows, 16))
    row_tile_eff = max(16, _round_up(row_tile_eff, 16))
    # Keep at least ~4 grid steps when there is enough work, so the "parallel"
    # row axis can be sharded across v7x's two TensorCores (but never shrink
    # the tile below 256 rows).
    if rows >= 4 * 256:
        row_tile_eff = min(row_tile_eff, max(256, _round_up((rows + 3) // 4, 16)))
    grid = (pl.cdiv(rows, row_tile_eff),)

    # Cast embeds once to the compute dtype, then derive the left / right
    # halves of the adjacent-pair concat as flat row slabs. The [B, S-1, 2E]
    # concat is never materialized; no host-side row padding (Pallas handles
    # the partial trailing block: OOB reads are unspecified garbage that only
    # feeds OOB output rows, and OOB writes are dropped).
    embeds_c = embeds.astype(compute_dtype)
    x_lo = embeds_c[:, :-1, :].reshape(rows, E)
    x_hi = embeds_c[:, 1:, :].reshape(rows, E)

    # Weights: split w1 into the x_lo / x_hi halves; zero-pad hidden and output
    # widths to 128 lanes (exact: padded hidden units are relu(0)=0 and padded
    # output columns stay 0, sliced off below).
    w1, b1, w2, b2 = params["w1"], params["b1"], params["w2"], params["b2"]
    hidden = w1.shape[1]
    tgt = w2.shape[1]                      # network_size + 1
    assert tgt == network_size + 1
    hidden_pad = _round_up(hidden, 128)
    out_pad = _round_up(tgt, 128)

    w1a = jnp.pad(w1[:E, :], ((0, 0), (0, hidden_pad - hidden))).astype(compute_dtype)
    w1b = jnp.pad(w1[E:, :], ((0, 0), (0, hidden_pad - hidden))).astype(compute_dtype)
    b1p = jnp.pad(b1, ((0, 0), (0, hidden_pad - hidden))).astype(jnp.float32)
    w2p = jnp.pad(w2, ((0, hidden_pad - hidden), (0, out_pad - tgt))).astype(compute_dtype)
    b2p = jnp.pad(b2, ((0, 0), (0, out_pad - tgt))).astype(jnp.float32)

    itemsize = jnp.dtype(compute_dtype).itemsize
    flops = 2 * rows * (2 * E * hidden_pad + hidden_pad * out_pad)
    bytes_accessed = ((x_lo.size + x_hi.size + w1a.size + w1b.size + w2p.size
                       + rows * out_pad) * itemsize
                      + (b1p.size + b2p.size) * 4)
    cost = pl.CostEstimate(flops=flops, transcendentals=0,
                           bytes_accessed=bytes_accessed)

    fused = pl.pallas_call(
        functools.partial(_mlp_kernel),
        out_shape=jax.ShapeDtypeStruct((rows, out_pad), compute_dtype),
        grid_spec=pltpu.PrefetchScalarGridSpec(
            num_scalar_prefetch=0,
            grid=grid,
            in_specs=[
                pl.BlockSpec((row_tile_eff, E),     lambda i: (i, 0)),  # x_lo tile
                pl.BlockSpec((row_tile_eff, E),     lambda i: (i, 0)),  # x_hi tile
                pl.BlockSpec((E, hidden_pad),       lambda i: (0, 0)),  # w1a (resident)
                pl.BlockSpec((E, hidden_pad),       lambda i: (0, 0)),  # w1b (resident)
                pl.BlockSpec((1, hidden_pad),       lambda i: (0, 0)),  # b1
                pl.BlockSpec((hidden_pad, out_pad), lambda i: (0, 0)),  # w2
                pl.BlockSpec((1, out_pad),          lambda i: (0, 0)),  # b2
            ],
            out_specs=pl.BlockSpec((row_tile_eff, out_pad), lambda i: (i, 0)),
        ),
        compiler_params=pltpu.CompilerParams(
            dimension_semantics=("parallel",),
            vmem_limit_bytes=32 * 1024 * 1024),
        cost_estimate=cost,
    )(x_lo, x_hi, w1a, w1b, b1p, w2p, b2p)

    # Sigmoid + column select in the wrapper: rows x 1 elements, effectively free.
    logits = fused[:, :tgt].astype(jnp.float32)
    links = logits[:, :network_size].reshape(B, S - 1, network_size)
    distances = jax.nn.sigmoid(
        logits[:, network_size:network_size + 1]).reshape(B, S - 1, 1)
    return links, distances


def make_params(embed_size, network_size, hidden_nodes, input_num, init_std=0.1):
    """Deterministic synthetic init mirroring NN(features_dim=E*input_num,
    targets_dim=network_size+1, num_hidden_nodes=hidden_nodes).
    Weights stored as [in, out] for the kernel (y = x @ W + b)."""
    feat = embed_size * input_num
    hidden = hidden_nodes[0]
    tgt = network_size + 1
    k = jax.random.PRNGKey(42)
    k1, k2 = jax.random.split(k)
    params = {
        "w1": (init_std * jax.random.normal(k1, (feat, hidden))).astype(jnp.float32),
        "b1": jnp.full((1, hidden), init_std, dtype=jnp.float32),   # b_init=('constant', init_std)
        "w2": (init_std * jax.random.normal(k2, (hidden, tgt))).astype(jnp.float32),
        "b2": jnp.zeros((1, tgt), dtype=jnp.float32),               # f_b_init=('constant', 0)
    }
    return params


def _reference(embeds, params, network_size):
    """Pure-JAX f32 reference for the same forward pass."""
    res = jnp.concatenate([embeds[:, :-1, :], embeds[:, 1:, :]], axis=2)
    h = jnp.maximum(res @ params["w1"] + params["b1"][0], 0.0)
    out = h @ params["w2"] + params["b2"][0]
    links = out[..., :network_size]
    dist = jax.nn.sigmoid(out[..., network_size:network_size + 1])
    return links, dist


if __name__ == "__main__":
    # Small shapes consistent with the module's forward.
    batch, seq_len, embed_size = 2, 8, 16
    network_size = 8
    hidden_nodes = [32]
    input_num = 2

    key = jax.random.PRNGKey(0)
    ke, km = jax.random.split(key)
    embeds = jax.random.normal(ke, (batch, seq_len, embed_size), dtype=jnp.float32)
    mask = (jax.random.uniform(km, (batch, seq_len, 1)) > 0.2).astype(jnp.float32)

    params = make_params(embed_size, network_size, hidden_nodes, input_num)

    links, distances = network_layer_forward(
        embeds, mask, params, network_size=network_size, input_num=input_num)
    links = jax.block_until_ready(links)
    distances = jax.block_until_ready(distances)

    # Sanity-check against pure-JAX f32 reference (kernel matmuls are bf16 with
    # f32 accumulation, logits stored bf16, so tolerance is relaxed accordingly).
    ref_links, ref_dist = _reference(embeds, params, network_size)
    assert links.shape == (batch, seq_len - 1, network_size)
    assert distances.shape == (batch, seq_len - 1, 1)
    assert jnp.allclose(links, ref_links, atol=2e-2, rtol=2e-2)
    assert jnp.allclose(distances, ref_dist, atol=2e-2, rtol=2e-2)

    print("KERNEL_OK")
</pallas_src>

<mosaic_0001>
module attributes {stable_mosaic.version = 11 : i64} {
  func.func @_mlp_kernel(%arg0: i32, %arg1: memref<16x16xbf16, #tpu.memory_space<vmem>>, %arg2: memref<16x16xbf16, #tpu.memory_space<vmem>>, %arg3: memref<16x128xbf16, #tpu.memory_space<vmem>>, %arg4: memref<16x128xbf16, #tpu.memory_space<vmem>>, %arg5: memref<1x128xf32, #tpu.memory_space<vmem>>, %arg6: memref<128x128xbf16, #tpu.memory_space<vmem>>, %arg7: memref<1x128xf32, #tpu.memory_space<vmem>>, %arg8: memref<16x128xbf16, #tpu.memory_space<vmem>>) attributes {dimension_semantics = [#tpu.dimension_semantics<parallel>], iteration_bounds = array<i64: 1>, scalar_prefetch = 0 : i64, scratch_operands = 0 : i64, tpu.core_type = #tpu.core_type<tc>, window_params = [{transform_indices = @transform_0, window_bounds = array<i64: 16, 16>}, {transform_indices = @transform_1, window_bounds = array<i64: 16, 16>}, {pipeline_mode = #tpu.pipeline_mode<synchronous>, transform_indices = @transform_2, window_bounds = array<i64: 16, 128>}, {pipeline_mode = #tpu.pipeline_mode<synchronous>, transform_indices = @transform_3, window_bounds = array<i64: 16, 128>}, {pipeline_mode = #tpu.pipeline_mode<synchronous>, transform_indices = @transform_4, window_bounds = array<i64: 1, 128>}, {pipeline_mode = #tpu.pipeline_mode<synchronous>, transform_indices = @transform_5, window_bounds = array<i64: 128, 128>}, {pipeline_mode = #tpu.pipeline_mode<synchronous>, transform_indices = @transform_6, window_bounds = array<i64: 1, 128>}, {transform_indices = @transform_7, window_bounds = array<i64: 16, 128>}]} {
    %c0 = arith.constant 0 : index
    %c0_0 = arith.constant 0 : index
    %0 = vector.load %arg1[%c0, %c0_0] : memref<16x16xbf16, #tpu.memory_space<vmem>>, vector<16x16xbf16>
    %c0_1 = arith.constant 0 : index
    %c0_2 = arith.constant 0 : index
    %1 = vector.load %arg3[%c0_1, %c0_2] : memref<16x128xbf16, #tpu.memory_space<vmem>>, vector<16x128xbf16>
    %cst = arith.constant dense<0.000000e+00> : vector<16x128xf32>
    %2 = tpu.matmul %0, %1, %cst {dimension_numbers = #tpu.dot_dimension_numbers<[1], [0], [0], [1], [0, 0, 1, 1], [], []>} : vector<16x16xbf16>, vector<16x128xbf16>, vector<16x128xf32> -> vector<16x128xf32>
    %c0_3 = arith.constant 0 : index
    %c0_4 = arith.constant 0 : index
    %3 = vector.load %arg2[%c0_3, %c0_4] : memref<16x16xbf16, #tpu.memory_space<vmem>>, vector<16x16xbf16>
    %c0_5 = arith.constant 0 : index
    %c0_6 = arith.constant 0 : index
    %4 = vector.load %arg4[%c0_5, %c0_6] : memref<16x128xbf16, #tpu.memory_space<vmem>>, vector<16x128xbf16>
    %cst_7 = arith.constant dense<0.000000e+00> : vector<16x128xf32>
    %5 = tpu.matmul %3, %4, %cst_7 {dimension_numbers = #tpu.dot_dimension_numbers<[1], [0], [0], [1], [0, 0, 1, 1], [], []>} : vector<16x16xbf16>, vector<16x128xbf16>, vector<16x128xf32> -> vector<16x128xf32>
    %6 = arith.addf %2, %5 : vector<16x128xf32>
    %c0_8 = arith.constant 0 : index
    %c0_9 = arith.constant 0 : index
    %7 = vector.load %arg5[%c0_8, %c0_9] : memref<1x128xf32, #tpu.memory_space<vmem>>, vector<1x128xf32>
    %8 = vector.broadcast %7 : vector<1x128xf32> to vector<16x128xf32>
    %9 = arith.addf %6, %8 : vector<16x128xf32>
    %cst_10 = arith.constant 0.000000e+00 : f32
    %10 = vector.broadcast %cst_10 : f32 to vector<16x128xf32>
    %11 = arith.maximumf %9, %10 : vector<16x128xf32>
    %12 = arith.truncf %11 : vector<16x128xf32> to vector<16x128xbf16>
    %c0_11 = arith.constant 0 : index
    %c0_12 = arith.constant 0 : index
    %13 = vector.load %arg6[%c0_11, %c0_12] : memref<128x128xbf16, #tpu.memory_space<vmem>>, vector<128x128xbf16>
    %cst_13 = arith.constant dense<0.000000e+00> : vector<16x128xf32>
    %14 = tpu.matmul %12, %13, %cst_13 {dimension_numbers = #tpu.dot_dimension_numbers<[1], [0], [0], [1], [0, 0, 1, 1], [], []>} : vector<16x128xbf16>, vector<128x128xbf16>, vector<16x128xf32> -> vector<16x128xf32>
    %c0_14 = arith.constant 0 : index
    %c0_15 = arith.constant 0 : index
    %15 = vector.load %arg7[%c0_14, %c0_15] : memref<1x128xf32, #tpu.memory_space<vmem>>, vector<1x128xf32>
    %16 = vector.broadcast %15 : vector<1x128xf32> to vector<16x128xf32>
    %17 = arith.addf %14, %16 : vector<16x128xf32>
    %18 = arith.truncf %17 : vector<16x128xf32> to vector<16x128xbf16>
    %c0_16 = arith.constant 0 : index
    %c0_17 = arith.constant 0 : index
    %19 = vector.load %arg8[%c0_16, %c0_17] : memref<16x128xbf16, #tpu.memory_space<vmem>>, vector<16x128xbf16>
    tpu.vector_store %arg8[%c0_16, %c0_17], %18 {strides = array<i32>} : memref<16x128xbf16, #tpu.memory_space<vmem>>, vector<16x128xbf16>,
    return
  }
  func.func @transform_0(%arg0: i32) -> (i32, i32) {
    %c0_i32 = arith.constant 0 : i32
    %c0_i32_0 = arith.constant 0 : i32
    return %arg0, %c0_i32 : i32, i32
  }
  func.func @transform_1(%arg0: i32) -> (i32, i32) {
    %c0_i32 = arith.constant 0 : i32
    %c0_i32_0 = arith.constant 0 : i32
    return %arg0, %c0_i32 : i32, i32
  }
  func.func @transform_2(%arg0: i32) -> (i32, i32) {
    %c0_i32 = arith.constant 0 : i32
    %c0_i32_0 = arith.constant 0 : i32
    %c0_i32_1 = arith.constant 0 : i32
    return %c0_i32, %c0_i32_0 : i32, i32
  }
  func.func @transform_3(%arg0: i32) -> (i32, i32) {
    %c0_i32 = arith.constant 0 : i32
    %c0_i32_0 = arith.constant 0 : i32
    %c0_i32_1 = arith.constant 0 : i32
    return %c0_i32, %c0_i32_0 : i32, i32
  }
  func.func @transform_4(%arg0: i32) -> (i32, i32) {
    %c0_i32 = arith.constant 0 : i32
    %c0_i32_0 = arith.constant 0 : i32
    %c0_i32_1 = arith.constant 0 : i32
    return %c0_i32, %c0_i32_0 : i32, i32
  }
  func.func @transform_5(%arg0: i32) -> (i32, i32) {
    %c0_i32 = arith.constant 0 : i32
    %c0_i32_0 = arith.constant 0 : i32
    %c0_i32_1 = arith.constant 0 : i32
    return %c0_i32, %c0_i32_0 : i32, i32
  }
  func.func @transform_6(%arg0: i32) -> (i32, i32) {
    %c0_i32 = arith.constant 0 : i32
    %c0_i32_0 = arith.constant 0 : i32
    %c0_i32_1 = arith.constant 0 : i32
    return %c0_i32, %c0_i32_0 : i32, i32
  }
  func.func @transform_7(%arg0: i32) -> (i32, i32) {
    %c0_i32 = arith.constant 0 : i32
    %c0_i32_0 = arith.constant 0 : i32
    return %arg0, %c0_i32 : i32, i32
  }
}

</mosaic_0001>

<bundles_post_ra>
// kernel: tpu_custom_call.1
= control target key start
LH: loop header
LB: loop body
LE: loop exit
PB: predicated region body
PF: predicated region fallthrough
CT: control target
= control target key end

     0   :  { %12 = vsyncpa [#allocation3], 0  ;;  %s680_s0 = inlined_call_operand.hbm [shape: bf16[14,16], index: 0, kind: input, shape index: {}]   ;;  %s681_s1 = inlined_call_operand.hbm [shape: bf16[14,16], index: 1, kind: input, shape index: {}]   ;;  %s682_s2 = inlined_call_operand.hbm [shape: bf16[16,128], index: 2, kind: input, shape index: {}]   ;;  %s683_s3 = inlined_call_operand.hbm [shape: bf16[16,128], index: 3, kind: input, shape index: {}]   ;;  %s684_s4 = inlined_call_operand.vmem [shape: f32[1,128], index: 4, kind: input, shape index: {}]   ;;  %s685_s5 = inlined_call_operand.hbm [shape: bf16[128,128], index: 5, kind: input, shape index: {}]   ;;  %s686_s6 = inlined_call_operand.vmem [shape: f32[1,128], index: 6, kind: input, shape index: {}]   ;;  %s687_s7 = inlined_call_operand.hbm [shape: bf16[14,128], index: 7, kind: output, shape index: {}]  }
   0x1   :  { %13 = vsyncpa [#allocation6], 0 }
   0x2   :  { %14 = vsyncpa [#allocation9], 0 }
   0x3   :  { %15 = vsyncpa [#allocation4], 0  ;;  %s588_s24 = smov [#allocation5]   ;;  %s589_s26 = smov [#allocation8]  }
   0x4   :  { %s33_s25 = sshll.u32 %s588_s24, 4  ;;  %s57_s27 = sshll.u32 %s589_s26, 4  ;;  %s34_s25 = int_to_ptr.vmem [resolvable:$true] %s33_s25  ;;  %s58_s27 = int_to_ptr.vmem [resolvable:$true] %s57_s27 }
   0x5   :  { %s468_s28 = scalar_lea.vmem %s34_s25, 128  ;;  %p473_p1 = scmp.lt.s32.totalorder %s34_s25, %s34_s25 }
   0x6   :  { %p469_p0 = scmp.ne.s32.totalorder %s34_s25, %s468_s28  ;;  %p474_p2 = scmp.lt.s32.totalorder %s468_s28, %s468_s28 }
   0x8   :  { %p475_p3 = por %p474_p2, %p473_p1 }
   0xa   :  { %p476_p4 = pnand %p475_p3, %p469_p0 }
   0xc   :  { %479 = shalt.err (!%p476_p4)
}
   0xd   :  { %s590_s29 = smov 64   ;;  %s591_s30 = smov 4  }
   0xe   :  { %39 = dma.hbm_to_vmem [thread:$0]  %s681_s1, 128, %s34_s25, [#allocation6], %s590_s29, %s590_s29, %s591_s30  }
   0xf   :  { %s488_s10 = scalar_lea.vmem %s58_s27, 128  ;;  %p493_p6 = scmp.lt.s32.totalorder %s58_s27, %s58_s27 }
  0x10   :  { %p489_p5 = scmp.ne.s32.totalorder %s58_s27, %s488_s10  ;;  %p494_p7 = scmp.lt.s32.totalorder %s488_s10, %s488_s10 }
  0x12   :  { %p495_p8 = por %p494_p7, %p493_p6 }
  0x14   :  { %p496_p9 = pnand %p495_p8, %p489_p5 }
  0x16   :  { %499 = shalt.err (!%p496_p9)
}
  0x17   :  { %63 = dma.hbm_to_vmem [thread:$0]  %s683_s3, 128, %s58_s27, [#allocation9], %s590_s29, %s590_s29, %s591_s30  }
  0x18   :  { %s592_s13 = smov [#allocation2]   ;;  %s593_s15 = smov [#allocation7]  }
  0x19   :  { %s21_s14 = sshll.u32 %s592_s13, 4  ;;  %s45_s16 = sshll.u32 %s593_s15, 4  ;;  %s22_s14 = int_to_ptr.vmem [resolvable:$true] %s21_s14  ;;  %s46_s16 = int_to_ptr.vmem [resolvable:$true] %s45_s16 }
  0x1a   :  { %s508_s1 = scalar_lea.vmem %s22_s14, 128  ;;  %p513_p11 = scmp.lt.s32.totalorder %s22_s14, %s22_s14 }
  0x1b   :  { %p509_p10 = scmp.ne.s32.totalorder %s22_s14, %s508_s1  ;;  %p514_p12 = scmp.lt.s32.totalorder %s508_s1, %s508_s1 }
  0x1d   :  { %p515_p13 = por %p514_p12, %p513_p11 }
  0x1f   :  { %p516_p0 = pnand %p515_p13, %p509_p10 }
  0x21   :  { %519 = shalt.err (!%p516_p0)
}
  0x22   :  { %27 = dma.hbm_to_vmem [thread:$0]  %s680_s0, 128, %s22_s14, [#allocation3], %s590_s29, %s590_s29, %s591_s30  }
  0x23   :  { %s528_s3 = scalar_lea.vmem %s46_s16, 128  ;;  %p533_p2 = scmp.lt.s32.totalorder %s46_s16, %s46_s16 }
  0x24   :  { %p529_p1 = scmp.ne.s32.totalorder %s46_s16, %s528_s3  ;;  %p534_p3 = scmp.lt.s32.totalorder %s528_s3, %s528_s3 }
  0x26   :  { %p535_p4 = por %p534_p3, %p533_p2 }
  0x28   :  { %p536_p5 = pnand %p535_p4, %p529_p1 }
  0x2a   :  { %539 = shalt.err (!%p536_p5)
}
  0x2b   :  { %51 = dma.hbm_to_vmem [thread:$0]  %s682_s2, 128, %s46_s16, [#allocation6], %s590_s29, %s590_s29, %s591_s30  }
  0x2c   :  { %s594_s21 = smov [#allocation10]  }
  0x2d   :  { %s71_s22 = sshll.u32 %s594_s21, 4  ;;  %s72_s22 = int_to_ptr.vmem [resolvable:$true] %s71_s22 }
  0x2e   :  { %s548_s23 = scalar_lea.vmem %s72_s22, 1024  ;;  %p553_p7 = scmp.lt.s32.totalorder %s72_s22, %s72_s22 }
  0x2f   :  { %p549_p6 = scmp.ne.s32.totalorder %s72_s22, %s548_s23  ;;  %p554_p8 = scmp.lt.s32.totalorder %s548_s23, %s548_s23 }
  0x31   :  { %p555_p9 = por %p554_p8, %p553_p7 }
  0x33   :  { %p556_p10 = pnand %p555_p9, %p549_p6 }
  0x35   :  { %559 = shalt.err (!%p556_p10)
}
  0x36   :  { %77 = dma.hbm_to_vmem [thread:$0]  %s685_s5, 1024, %s72_s22, [#allocation9], %s590_s29, %s590_s29, %s591_s30  }
  0x37   :  { %580 = dma.done.wait [#allocation3], 128  }
  0x38   :  { %581 = vsyncadd [#allocation3], 4294967168 }
  0x39   :  { %582 = dma.done.wait [#allocation6], 256  }
  0x3a   :  { %583 = vsyncadd [#allocation6], 4294967040 }
  0x3b   :  { %584 = dma.done.wait [#allocation9], 1152  }
  0x3c   :  { %585 = vsyncadd [#allocation9], 4294966144  ;;  %v595_v0 = vmov 0.0   ;;  %vm596_vm0 = vmmov 0   ;;  %v448_v1 = vld [vmem:[#allocation8] sm:$0xff]   ;;  %v449_v2 = vld [vmem:[#allocation5] sm:$0xff]  }
  0x3d   :  { %406 = vmatprep.subr.bf16.mxu1 %v595_v0  ;;  %408 = vmatprep.mubr.msk.bf16.mxu1 %vm596_vm0, %v595_v0  ;;  %vm115_vm1 = vcmask 130048   ;;  %v450_v3 = vld [vmem:[#allocation7] sm:$0xff]   ;;  %v452_v4 = vld [vmem:[#allocation10 + $0x38] sm:$0xff]   ;;  %v451_v6 = vld [vmem:[#allocation2] sm:$0xff]   ;;  %s597_s27 = smov [#allocation11]  }
  0x3e   :  { %418 = vmatprep.subr.bf16.mxu0 %v595_v0  ;;  %434 = vmatprep.mubr.msk.bf16.mxu0 %vm596_vm0, %v595_v0  ;;  %v453_v5 = vld [vmem:[#allocation10 + $0x30] sm:$0xff]   ;;  %v454_v7 = vld [vmem:[#allocation10 + $0x28] sm:$0xff]   ;;  %v455_v8 = vld [vmem:[#allocation10 + $0x20] sm:$0xff]   ;;  %s354_s28 = sshll.u32 %s597_s27, 4  ;;  %s355_s28 = int_to_ptr.vmem [resolvable:$true] %s354_s28 }
  0x3f   :  { %407 = vmatpush3.bf16.msra.mxu1 %v448_v1  ;;  %419 = vmatpush3.bf16.msra.mxu0 %v452_v4  ;;  %v456_v9 = vld [vmem:[#allocation10 + $0x18] sm:$0xff]   ;;  %v457_v10 = vld [vmem:[#allocation10 + $0x10] sm:$0xff]   ;;  %v458_v11 = vld [vmem:[#allocation10 + $0x8] sm:$0xff]   ;;  %p565_p12 = scmp.lt.s32.totalorder %s355_s28, %s355_s28 }
  0x40   :  { %412 = vmatprep.subr.bf16.mxu1 %v595_v0  ;;  %420 = vmatprep.subr.bf16.mxu0 %v595_v0  ;;  %v459_v12 = vld [vmem:[#allocation10] sm:$0xff]  }
  0x41   :  { %v374_v19 = vld [vmem:[%s684_s4] ss:$0 sm:$0xff]  ;;  %s560_s4 = scalar_lea.vmem %s355_s28, 128 }
  0x42   :  { %409 = vmatmul.mubr.msk.bf16.vlgmr.msra.gmra.mxu1 %vm115_vm1, %v449_v2  ;;  %v375_v30 = vld [vmem:[%s686_s6] ss:$0 sm:$0xff]  ;;  %p561_p11 = scmp.ne.s32.totalorder %s355_s28, %s560_s4  ;;  %p566_p13 = scmp.lt.s32.totalorder %s560_s4, %s560_s4 }
  0x43   :  { %413 = vmatpush3.bf16.msra.mxu1 %v450_v3  ;;  %414 = vmatprep.mubr.msk.bf16.mxu1 %vm596_vm0, %v595_v0 }
  0x44   :  { %421 = vmatpush3.bf16.msra.mxu0 %v453_v5  ;;  %p567_p0 = por %p566_p13, %p565_p12 }
  0x45   :  { %422 = vmatprep.subr.bf16.mxu0 %v595_v0 }
  0x46   :  { %p568_p1 = pnand %p567_p0, %p561_p11 }
  0x48   :  { %423 = vmatpush3.bf16.msra.mxu0 %v454_v7 }
  0x49   :  { %424 = vmatprep.subr.bf16.mxu0 %v595_v0 }
  0x4a   :  { %415 = vmatmul.mubr.msk.bf16.vlgmr.msra.gmra.mxu1 %vm115_vm1, %v451_v6 }
  0x4c   :  { %425 = vmatpush3.bf16.msra.mxu0 %v455_v8 }
  0x4d   :  { %426 = vmatprep.subr.bf16.mxu0 %v595_v0 }
  0x50   :  { %427 = vmatpush3.bf16.msra.mxu0 %v456_v9 }
  0x51   :  { %428 = vmatprep.subr.bf16.mxu0 %v595_v0 }
  0x54   :  { %429 = vmatpush3.bf16.msra.mxu0 %v457_v10 }
  0x55   :  { %430 = vmatprep.subr.bf16.mxu0 %v595_v0 }
  0x58   :  { %431 = vmatpush3.bf16.msra.mxu0 %v458_v11 }
  0x59   :  { %432 = vmatprep.subr.bf16.mxu0 %v595_v0 }
  0x5c   :  { %433 = vmatpush3.bf16.msra.mxu0 %v459_v12 }
 0x102   :  { %v153_v13 = vpop.f32.mrf.mxu1 }
 0x104   :  { %v410_v14 = vpop.f32.mrf.mxu1 }
 0x106   :  { %v156_v15 = vpop.f32.mrf.mxu1 }
 0x108   :  { %v411_v16 = vpop.f32.mrf.mxu1 }
 0x10a   :  { %v208_v17 = vpop.f32.mrf.mxu1 }
 0x10b   :  { %v209_v18 = vadd.f32 %v208_v17, %v153_v13 }
 0x10c   :  { %v416_v20 = vpop.f32.mrf.mxu1 }
 0x10d   :  { %v222_v22 = vadd.f32 %v374_v19, %v209_v18 }
 0x10e   :  { %v211_v21 = vpop.f32.mrf.mxu1 }
 0x10f   :  { %v212_v23 = vadd.f32 %v211_v21, %v156_v15  ;;  %v224_v26 = vmax.f32 %v222_v22, 0.0 }
 0x110   :  { %v417_v24 = vpop.f32.mrf.mxu1 }
 0x111   :  { %v223_v25 = vadd.f32 %v374_v19, %v212_v23 }
 0x113   :  { %v225_v27 = vmax.f32 %v223_v25, 0.0 }
 0x115   :  { %v226_v28 = vpack.c.bf16 %v225_v27, %v224_v26 }
 0x117   :  { %435 = vmatmul.mubr.bf16.vlgmr.msra.gmra.mxu0 %v226_v28 }
 0x1d7   :  { %v332_v29 = vpop.f32.mrf.mxu0 }
 0x1d8   :  { %v333_v33 = vadd.f32 %v375_v30, %v332_v29 }
 0x1d9   :  { %v436_v31 = vpop.f32.mrf.mxu0 }
 0x1db   :  { %v335_v32 = vpop.f32.mrf.mxu0 }
 0x1dc   :  { %v336_v34 = vadd.f32 %v375_v30, %v335_v32 }
 0x1dd   :  { %v437_v35 = vpop.f32.mrf.mxu0 }
 0x1de   :  { %v391_v36 = vpack.c.bf16 %v336_v34, %v333_v33 }
 0x1e0   :  { %392 = vst [vmem:[#allocation11] sm:$0xff] %v391_v36  }
 0x1e1   :  { %571 = shalt.err (!%p568_p1)
}
 0x1e2   :  { %360 = dma.vmem_to_hbm [thread:$0]  %s355_s28, 128, %s687_s7, [#allocation4], %s590_s29, %s590_s29, %s591_s30  }
 0x1e3   :  { %586 = dma.done.wait [#allocation4], 128  }
 0x1e4   :  { %587 = vsyncadd [#allocation4], 4294967168 }
 0x1e5   :  { %364 = vsyncpa [#allocation3], 1 }
 0x1e6   :  { %365 = vsyncpa [#allocation6], 1 }
 0x1e7   :  { %366 = vsyncpa [#allocation9], 1 }
 0x1e8   :  { %367 = vsyncpa [#allocation4], 1 }

</bundles_post_ra>
